<compile_context>
chip_gen: v7x
topology: tpu7x:2x2x1
jax: 0.10.0
libtpu: 0.0.40
codegen_flags: <defaults>
</compile_context>

<pallas_src>
import jax
import jax.numpy as jnp
from jax.experimental import pallas as pl
from jax.experimental.pallas import tpu as pltpu

N_EMBD = 32
HIDDEN = 4 * N_EMBD   # 128

# Rows per grid step: fills the MXU M-dimension on all generations while the
# per-step footprint (bf16 x-tile + f32 out-tile, double-buffered, + f32
# hidden + resident weights) stays well under 2 MiB.
TILE_N = 512


def _round_up(n, m):
    return ((n + m - 1) // m) * m


def _ffn_kernel(x_ref, w1_ref, b1_ref, w2_ref, b2_ref, o_ref):
    # x_ref: (tile_n, C) bf16.  Both matmuls are native-bf16 MXU pushes with
    # f32 accumulation; the bias/ReLU epilogue stays in f32.
    x = x_ref[...]

    # Linear(n_embd, 4*n_embd) + bias + ReLU
    h = jnp.dot(x, w1_ref[...], preferred_element_type=jnp.float32)
    h = jnp.maximum(h + b1_ref[...], 0.0)

    # Linear(4*n_embd, n_embd) + bias
    out = jnp.dot(h.astype(jnp.bfloat16), w2_ref[...],
                  preferred_element_type=jnp.float32)
    out = out + b2_ref[...]

    # Dropout(p=0.2) is identity at inference time.
    o_ref[...] = out.astype(o_ref.dtype)


def feed_forward(x, w1, b1, w2, b2, *, tile_n=TILE_N):
    """x: (B, T, C); w1: (C, 4C); b1: (4C,); w2: (4C, C); b2: (C,)."""
    B, T, C = x.shape
    H = w1.shape[1]
    N = B * T
    out_dtype = x.dtype

    # Row tile: multiple of 8 (sublane), capped at tile_n; pad N so every grid
    # step is a full tile (padded rows computed then sliced off).
    tile = min(tile_n, _round_up(N, 8))
    n_pad = _round_up(N, tile)

    x2d = x.reshape(N, C).astype(jnp.bfloat16)
    if n_pad != N:
        x2d = jnp.pad(x2d, ((0, n_pad - N), (0, 0)))

    w1_bf = w1.astype(jnp.bfloat16)
    w2_bf = w2.astype(jnp.bfloat16)
    b1_2d = b1.reshape(1, H).astype(jnp.float32)
    b2_2d = b2.reshape(1, C).astype(jnp.float32)

    grid = (n_pad // tile,)

    cost = pl.CostEstimate(
        flops=4 * N * C * H,                       # two matmuls: 2*N*C*H each
        transcendentals=0,
        bytes_accessed=(N * C * 2 + N * C * 4      # x (bf16) + out (f32)
                        + C * H * 2 + H * C * 2    # W1 + W2 (bf16)
                        + H * 4 + C * 4),          # biases (f32)
    )

    out2d = pl.pallas_call(
        _ffn_kernel,
        out_shape=jax.ShapeDtypeStruct((n_pad, C), out_dtype),
        grid_spec=pl.GridSpec(
            grid=grid,
            in_specs=[
                pl.BlockSpec((tile, C), lambda i: (i, 0)),   # x   (row-tiled)
                pl.BlockSpec((C, H), lambda i: (0, 0)),      # W1  (resident)
                pl.BlockSpec((1, H), lambda i: (0, 0)),      # b1  (resident)
                pl.BlockSpec((H, C), lambda i: (0, 0)),      # W2  (resident)
                pl.BlockSpec((1, C), lambda i: (0, 0)),      # b2  (resident)
            ],
            out_specs=pl.BlockSpec((tile, C), lambda i: (i, 0)),
        ),
        compiler_params=pltpu.CompilerParams(
            dimension_semantics=("parallel",),   # shards rows across v7x's 2 TCs
            vmem_limit_bytes=32 * 1024 * 1024,
        ),
        cost_estimate=cost,
    )(x2d, w1_bf, b1_2d, w2_bf, b2_2d)

    return out2d[:N].reshape(B, T, C)


def _reference_bf16(x, w1, b1, w2, b2):
    """Pure-JAX reference with the kernel's dtype policy (bf16 MXU operands,
    f32 accumulation + epilogue, dropout = identity)."""
    h = jnp.dot(x.astype(jnp.bfloat16), w1.astype(jnp.bfloat16),
                preferred_element_type=jnp.float32) + b1
    h = jnp.maximum(h, 0.0)
    out = jnp.dot(h.astype(jnp.bfloat16), w2.astype(jnp.bfloat16),
                  preferred_element_type=jnp.float32) + b2
    return out.astype(x.dtype)


def _reference_f32(x, w1, b1, w2, b2):
    """Full-f32 reference matching the PyTorch forward (dropout = identity)."""
    h = jnp.maximum(jnp.dot(x, w1) + b1, 0.0)
    return jnp.dot(h, w2) + b2


if __name__ == "__main__":
    key = jax.random.PRNGKey(0)
    kx, k1, kb1, k2, kb2 = jax.random.split(key, 5)

    B, T, C, H = 2, 8, N_EMBD, HIDDEN

    x = jax.random.normal(kx, (B, T, C), dtype=jnp.float32)
    # nn.Linear(n_embd, 4*n_embd)
    w1 = jax.random.normal(k1, (C, H), dtype=jnp.float32) * (1.0 / jnp.sqrt(C))
    b1 = jax.random.normal(kb1, (H,), dtype=jnp.float32) * 0.01
    # nn.Linear(4*n_embd, n_embd)
    w2 = jax.random.normal(k2, (H, C), dtype=jnp.float32) * (1.0 / jnp.sqrt(H))
    b2 = jax.random.normal(kb2, (C,), dtype=jnp.float32) * 0.01

    out = feed_forward(x, w1, b1, w2, b2)
    out = jax.block_until_ready(out)

    ref = _reference_bf16(x, w1, b1, w2, b2)
    ref_f32 = _reference_f32(x, w1, b1, w2, b2)

    assert out.shape == (B, T, C)
    assert jnp.allclose(out, ref, atol=1e-3, rtol=1e-3), "mismatch vs bf16 reference"
    assert jnp.allclose(out, ref_f32, atol=1e-1, rtol=1e-1), "mismatch vs f32 reference"

    print("KERNEL_OK")
</pallas_src>

<mosaic_0001>
module attributes {stable_mosaic.version = 11 : i64} {
  func.func @_ffn_kernel(%arg0: i32, %arg1: memref<16x32xbf16, #tpu.memory_space<vmem>>, %arg2: memref<32x128xbf16, #tpu.memory_space<vmem>>, %arg3: memref<1x128xf32, #tpu.memory_space<vmem>>, %arg4: memref<128x32xbf16, #tpu.memory_space<vmem>>, %arg5: memref<1x32xf32, #tpu.memory_space<vmem>>, %arg6: memref<16x32xf32, #tpu.memory_space<vmem>>) attributes {dimension_semantics = [#tpu.dimension_semantics<parallel>], iteration_bounds = array<i64: 1>, scalar_prefetch = 0 : i64, scratch_operands = 0 : i64, tpu.core_type = #tpu.core_type<tc>, window_params = [{transform_indices = @transform_0, window_bounds = array<i64: 16, 32>}, {pipeline_mode = #tpu.pipeline_mode<synchronous>, transform_indices = @transform_1, window_bounds = array<i64: 32, 128>}, {pipeline_mode = #tpu.pipeline_mode<synchronous>, transform_indices = @transform_2, window_bounds = array<i64: 1, 128>}, {pipeline_mode = #tpu.pipeline_mode<synchronous>, transform_indices = @transform_3, window_bounds = array<i64: 128, 32>}, {pipeline_mode = #tpu.pipeline_mode<synchronous>, transform_indices = @transform_4, window_bounds = array<i64: 1, 32>}, {transform_indices = @transform_5, window_bounds = array<i64: 16, 32>}]} {
    %c0 = arith.constant 0 : index
    %c0_0 = arith.constant 0 : index
    %0 = vector.load %arg1[%c0, %c0_0] : memref<16x32xbf16, #tpu.memory_space<vmem>>, vector<16x32xbf16>
    %c0_1 = arith.constant 0 : index
    %c0_2 = arith.constant 0 : index
    %1 = vector.load %arg2[%c0_1, %c0_2] : memref<32x128xbf16, #tpu.memory_space<vmem>>, vector<32x128xbf16>
    %cst = arith.constant dense<0.000000e+00> : vector<16x128xf32>
    %2 = tpu.matmul %0, %1, %cst {dimension_numbers = #tpu.dot_dimension_numbers<[1], [0], [0], [1], [0, 0, 1, 1], [], []>} : vector<16x32xbf16>, vector<32x128xbf16>, vector<16x128xf32> -> vector<16x128xf32>
    %c0_3 = arith.constant 0 : index
    %c0_4 = arith.constant 0 : index
    %3 = vector.load %arg3[%c0_3, %c0_4] : memref<1x128xf32, #tpu.memory_space<vmem>>, vector<1x128xf32>
    %4 = vector.broadcast %3 : vector<1x128xf32> to vector<16x128xf32>
    %5 = arith.addf %2, %4 : vector<16x128xf32>
    %cst_5 = arith.constant 0.000000e+00 : f32
    %6 = vector.broadcast %cst_5 : f32 to vector<16x128xf32>
    %7 = arith.maximumf %5, %6 : vector<16x128xf32>
    %8 = arith.truncf %7 : vector<16x128xf32> to vector<16x128xbf16>
    %c0_6 = arith.constant 0 : index
    %c0_7 = arith.constant 0 : index
    %9 = vector.load %arg4[%c0_6, %c0_7] : memref<128x32xbf16, #tpu.memory_space<vmem>>, vector<128x32xbf16>
    %cst_8 = arith.constant dense<0.000000e+00> : vector<16x32xf32>
    %10 = tpu.matmul %8, %9, %cst_8 {dimension_numbers = #tpu.dot_dimension_numbers<[1], [0], [0], [1], [0, 0, 1, 1], [], []>} : vector<16x128xbf16>, vector<128x32xbf16>, vector<16x32xf32> -> vector<16x32xf32>
    %c0_9 = arith.constant 0 : index
    %c0_10 = arith.constant 0 : index
    %11 = vector.load %arg5[%c0_9, %c0_10] : memref<1x32xf32, #tpu.memory_space<vmem>>, vector<1x32xf32>
    %12 = vector.broadcast %11 : vector<1x32xf32> to vector<16x32xf32>
    %13 = arith.addf %10, %12 : vector<16x32xf32>
    %c0_11 = arith.constant 0 : index
    %c0_12 = arith.constant 0 : index
    %14 = vector.load %arg6[%c0_11, %c0_12] : memref<16x32xf32, #tpu.memory_space<vmem>>, vector<16x32xf32>
    tpu.vector_store %arg6[%c0_11, %c0_12], %13 {strides = array<i32>} : memref<16x32xf32, #tpu.memory_space<vmem>>, vector<16x32xf32>,
    return
  }
  func.func @transform_0(%arg0: i32) -> (i32, i32) {
    %c0_i32 = arith.constant 0 : i32
    %c0_i32_0 = arith.constant 0 : i32
    return %arg0, %c0_i32 : i32, i32
  }
  func.func @transform_1(%arg0: i32) -> (i32, i32) {
    %c0_i32 = arith.constant 0 : i32
    %c0_i32_0 = arith.constant 0 : i32
    %c0_i32_1 = arith.constant 0 : i32
    return %c0_i32, %c0_i32_0 : i32, i32
  }
  func.func @transform_2(%arg0: i32) -> (i32, i32) {
    %c0_i32 = arith.constant 0 : i32
    %c0_i32_0 = arith.constant 0 : i32
    %c0_i32_1 = arith.constant 0 : i32
    return %c0_i32, %c0_i32_0 : i32, i32
  }
  func.func @transform_3(%arg0: i32) -> (i32, i32) {
    %c0_i32 = arith.constant 0 : i32
    %c0_i32_0 = arith.constant 0 : i32
    %c0_i32_1 = arith.constant 0 : i32
    return %c0_i32, %c0_i32_0 : i32, i32
  }
  func.func @transform_4(%arg0: i32) -> (i32, i32) {
    %c0_i32 = arith.constant 0 : i32
    %c0_i32_0 = arith.constant 0 : i32
    %c0_i32_1 = arith.constant 0 : i32
    return %c0_i32, %c0_i32_0 : i32, i32
  }
  func.func @transform_5(%arg0: i32) -> (i32, i32) {
    %c0_i32 = arith.constant 0 : i32
    %c0_i32_0 = arith.constant 0 : i32
    return %arg0, %c0_i32 : i32, i32
  }
}

</mosaic_0001>

<bundles_post_ra>
// kernel: tpu_custom_call.1
= control target key start
LH: loop header
LB: loop body
LE: loop exit
PB: predicated region body
PF: predicated region fallthrough
CT: control target
= control target key end

     0   :  { %v324_v1 = vmov 0.0   ;;  %vm325_vm0 = vmmov 0   ;;  %vm52_vm1 = vcmask 261120   ;;  %s413_s0 = inlined_call_operand.vmem [shape: bf16[16,32], index: 0, kind: input, shape index: {}]   ;;  %s414_s1 = inlined_call_operand.vmem [shape: bf16[32,128], index: 1, kind: input, shape index: {}]   ;;  %s415_s2 = inlined_call_operand.vmem [shape: f32[1,128], index: 2, kind: input, shape index: {}]   ;;  %s416_s3 = inlined_call_operand.vmem [shape: bf16[128,32], index: 3, kind: input, shape index: {}]   ;;  %s417_s4 = inlined_call_operand.vmem [shape: f32[1,32], index: 4, kind: input, shape index: {}]   ;;  %s418_s5 = inlined_call_operand.hbm [shape: f32[16,32], index: 5, kind: output, shape index: {}]  }
   0x1   :  { %v289_v0 = vld [vmem:[%s414_s1] sm:$0xff]   ;;  %256 = vmatprep.subr.bf16.mxu0 %v324_v1  ;;  %264 = vmatprep.subr.bf16.mxu1 %v324_v1  ;;  %v290_v2 = vld [vmem:[%s414_s1 + $0x8] sm:$0xff]   ;;  %v294_v6 = vld [vmem:[%s416_s3 + $0x10] sm:$0xff]  }
   0x2   :  { %257 = vmatpush3.bf16.msra.mxu0 %v289_v0  ;;  %260 = vmatprep.mubr.msk.bf16.mxu0 %vm325_vm0, %v324_v1  ;;  %v292_v3 = vld [vmem:[%s416_s3] sm:$0xff]   ;;  %v293_v5 = vld [vmem:[%s416_s3 + $0x8] sm:$0xff]  }
   0x3   :  { %258 = vmatprep.subr.bf16.mxu0 %v324_v1  ;;  %280 = vmatprep.mubr.msk.bf16.mxu1 %vm325_vm0, %v324_v1  ;;  %v291_v4 = vld [vmem:[%s413_s0] sm:$0xff]  }
   0x4   :  { %265 = vmatpush3.bf16.msra.mxu1 %v292_v3 }
   0x5   :  { %266 = vmatprep.subr.bf16.mxu1 %v324_v1 }
   0x6   :  { %259 = vmatpush3.bf16.msra.mxu0 %v290_v2 }
   0x8   :  { %267 = vmatpush3.bf16.msra.mxu1 %v293_v5 }
   0x9   :  { %261 = vmatmul.mubr.msk.bf16.vlgmr.msra.gmra.mrb[0].mxu0 %vm52_vm1, %v291_v4  ;;  %268 = vmatprep.subr.bf16.mxu1 %v324_v1 }
   0xa   :  { %10 = vsyncpa [#allocation3], 0  ;;  %v295_v7 = vld [vmem:[%s416_s3 + $0x18] sm:$0xff]   ;;  %v296_v8 = vld [vmem:[%s416_s3 + $0x20] sm:$0xff]  }
   0xb   :  { %v297_v9 = vld [vmem:[%s416_s3 + $0x28] sm:$0xff]   ;;  %v298_v10 = vld [vmem:[%s416_s3 + $0x30] sm:$0xff]   ;;  %v299_v11 = vld [vmem:[%s416_s3 + $0x38] sm:$0xff]   ;;  %s326_s3 = smov [#allocation2]  }
   0xc   :  { %269 = vmatpush3.bf16.msra.mxu1 %v294_v6  ;;  %v230_v12 = vld [vmem:[%s415_s2] ss:$0 sm:$0xff]  ;;  %s219_s17 = sshll.u32 %s326_s3, 4  ;;  %s220_s17 = int_to_ptr.vmem [resolvable:$true] %s219_s17 }
   0xd   :  { %270 = vmatprep.subr.bf16.mxu1 %v324_v1  ;;  %v235_v22 = vld [vmem:[%s417_s4] ss:$0 sm:$0xff]  ;;  %s300_s2 = scalar_lea.vmem %s220_s17, 256  ;;  %p305_p1 = scmp.lt.s32.totalorder %s220_s17, %s220_s17 }
   0xe   :  { %p301_p0 = scmp.ne.s32.totalorder %s220_s17, %s300_s2  ;;  %p306_p2 = scmp.lt.s32.totalorder %s300_s2, %s300_s2 }
  0x10   :  { %271 = vmatpush3.bf16.msra.mxu1 %v295_v7  ;;  %p307_p3 = por %p306_p2, %p305_p1 }
  0x11   :  { %272 = vmatprep.subr.bf16.mxu1 %v324_v1 }
  0x12   :  { %p308_p4 = pnand %p307_p3, %p301_p0 }
  0x14   :  { %273 = vmatpush3.bf16.msra.mxu1 %v296_v8 }
  0x15   :  { %274 = vmatprep.subr.bf16.mxu1 %v324_v1 }
  0x18   :  { %275 = vmatpush3.bf16.msra.mxu1 %v297_v9 }
  0x19   :  { %276 = vmatprep.subr.bf16.mxu1 %v324_v1 }
  0x1c   :  { %277 = vmatpush3.bf16.msra.mxu1 %v298_v10 }
  0x1d   :  { %278 = vmatprep.subr.bf16.mxu1 %v324_v1 }
  0x20   :  { %279 = vmatpush3.bf16.msra.mxu1 %v299_v11 }
  0xdc   :  { %v90_v13 = vpop.f32.mrb[0].mxu0 }
  0xdd   :  { %v91_v14 = vadd.f32 %v230_v12, %v90_v13  ;;  %v262_v15 = vpop.f32.mrb[1].mxu0 }
  0xde   :  { %v93_v16 = vpop.f32.mrb[2].mxu0 }
  0xdf   :  { %v94_v17 = vadd.f32 %v230_v12, %v93_v16  ;;  %v263_v18 = vpop.f32.mrb[3].mxu0  ;;  %v97_v19 = vmax.f32 %v91_v14, 0.0 }
  0xe1   :  { %v98_v20 = vmax.f32 %v94_v17, 0.0 }
  0xe3   :  { %v99_v21 = vpack.c.bf16 %v98_v20, %v97_v19 }
  0xe5   :  { %281 = vmatmul.mubr.bf16.vlgmr.msra.gmra.mrb[0].mxu1 %v99_v21 }
 0x1b8   :  { %v205_v23 = vpop.f32.mrb[0].mxu1 }
 0x1b9   :  { %v206_v24 = vadd.f32 %v235_v22, %v205_v23  ;;  %v282_v25 = vpop.f32.mrb[1].mxu1 }
 0x1ba   :  { %v208_v26 = vpop.f32.mrb[2].mxu1 }
 0x1bb   :  { %212 = vst.msk [vmem:[#allocation2] sm:$0xff] %vm52_vm1, %v206_v24  ;;  %v209_v27 = vadd.f32 %v235_v22, %v208_v26  ;;  %v283_v28 = vpop.f32.mrb[3].mxu1 }
 0x1bd   :  { %213 = vst.msk [vmem:[#allocation2 + $0x8] sm:$0xff] %vm52_vm1, %v209_v27 }
 0x1be   :  { %311 = shalt.err (!%p308_p4)
}
 0x1bf   :  { %s312_s19 = scalar_lea.hbm %s418_s5, 256 }
 0x1c0   :  { %p313_p5 = scmp.ne.s32.totalorder %s418_s5, %s312_s19  ;;  %p316_p6 = scmp.lt.u32.totalorder %s312_s19, %s418_s5 }
 0x1c2   :  { %p318_p7 = pnand %p316_p6, %p313_p5 }
 0x1c4   :  { %321 = shalt.err (!%p318_p7)
}
 0x1c5   :  { %s327_s24 = smov 128   ;;  %s328_s25 = smov 8  }
 0x1c6   :  { %225 = dma.vmem_to_hbm [thread:$0]  %s220_s17, 256, %s418_s5, [#allocation3], %s327_s24, %s327_s24, %s328_s25  }
 0x1c7   :  { %322 = dma.done.wait [#allocation3], 256  }
 0x1c8   :  { %323 = vsyncadd [#allocation3], 4294967040 }
 0x1c9   :  { %229 = vsyncpa [#allocation3], 1 }

</bundles_post_ra>
